<compile_context>
chip_gen: v7x
topology: tpu7x:2x2x1
jax: 0.10.0
libtpu: 0.0.40
codegen_flags: <defaults>
</compile_context>

<pallas_src>
import jax
import jax.numpy as jnp
from jax.experimental import pallas as pl
from jax.experimental.pallas import tpu as pltpu


def coord_att_kernel(x_ref, s_ref, eh_ref, ew_ref, w1_ref, t1_ref,
                     wh_ref, bh_ref, ww_ref, bw_ref, o_ref):
    h = eh_ref.shape[0]                      # H (static)

    x = x_ref[...]                           # (nb*C, H*W), input dtype
    x_bf = x.astype(jnp.bfloat16)            # bf16 copy only feeds the MXU pooling

    # Coordinate pooling as one bf16 MXU matmul (f32 accumulation).
    # Column order matches torch.cat: pools[:, :H] = mean over W (pool_h),
    # pools[:, H:] = mean over H (pool_w).
    pools = jnp.dot(x_bf, s_ref[...], preferred_element_type=jnp.float32)   # (nb*C, H+W)

    # Shared branch: 1x1 conv (BN scale already folded into the weight) +
    # folded shift + Hardswish, for all packed images at once (block-diag w1).
    y = jnp.dot(w1_ref[...], pools, preferred_element_type=jnp.float32) + t1_ref[...]
    y = y * jnp.clip(y + 3.0, 0.0, 6.0) * (1.0 / 6.0)                        # hardswish

    a_h = jax.nn.sigmoid(
        jnp.dot(wh_ref[...], y[:, :h], preferred_element_type=jnp.float32) + bh_ref[...])
    a_w = jax.nn.sigmoid(
        jnp.dot(ww_ref[...], y[:, h:], preferred_element_type=jnp.float32) + bw_ref[...])

    # Broadcast a_h over columns / a_w over rows directly in the flat (.., H*W)
    # layout via bf16 0/1 selector matmuls (no output-sized relayout).
    att = (jnp.dot(a_h.astype(jnp.bfloat16), eh_ref[...],
                   preferred_element_type=jnp.float32) *
           jnp.dot(a_w.astype(jnp.bfloat16), ew_ref[...],
                   preferred_element_type=jnp.float32))                      # (nb*C, H*W)

    # Final identity * attention in the input dtype (bf16 stays bf16).
    o_ref[...] = (x * att.astype(x.dtype)).astype(o_ref.dtype)


def _tpu_vmem_capacity_bytes():
    try:
        return int(pltpu.get_tpu_info().vmem_capacity_bytes)
    except Exception:
        return 64 << 20          # conservative (v7x-sized) fallback


def _vmem_estimate(nb, c, h, w, mip, x_itemsize):
    """Rough per-kernel VMEM footprint for a block of nb images."""
    hw = h * w
    rows = nb * c
    blk = rows * hw
    io = 2 * 2 * blk * x_itemsize                                  # in + out, double-buffered
    consts = 2 * 2 * hw * (h + w) * 2                              # S + Eh + Ew (bf16), x2 buffers
    wgt = 2 * 4 * (3 * rows * nb * mip + nb * mip + 2 * rows)      # block-diag weights + biases
    temps = blk * (2 + 4) + blk * x_itemsize + 3 * rows * (h + w) * 4
    return io + consts + wgt + temps + (2 << 20)                   # + headroom


def _pick_batch_block(n, c, h, w, mip, x_itemsize, target_block_bytes,
                      vmem_budget, max_nb=16):
    """Pick nb = images packed per grid step.

    Constraints: nb | N ; (nb*C) % 8 == 0 or nb == N (sublane-legal block);
    the block + constants + temporaries fit the VMEM budget.
    Preference: biggest nb that still leaves >= 4 grid steps (2 per v7x
    TensorCore), else >= 2, else whatever is legal.
    """
    hw = h * w
    per_image = c * hw * x_itemsize
    divisors = [d for d in range(1, n + 1) if n % d == 0]
    legal = [d for d in divisors if (d * c) % 8 == 0 or d == n]
    fitting = [d for d in legal
               if d <= max_nb
               and d * per_image <= target_block_bytes
               and _vmem_estimate(d, c, h, w, mip, x_itemsize) <= vmem_budget]
    if not fitting:
        # TODO(synk): at very large H*W even one image plus the bf16 selector
        # constants may not fit VMEM; that would need spatial tiling of H*W,
        # which this kernel does not implement.
        fitting = [min(legal)]
    for min_steps in (4, 2, 1):
        cands = [d for d in fitting if n // d >= min_steps]
        if cands:
            return max(cands)
    return max(fitting)


def coord_att(x, params, eps=1e-5):
    """x: (N, C, H, W). params: dict of deterministic CoordAtt parameters."""
    n, c, h, w = x.shape
    hw = h * w
    w1, b1 = params["w1"], params["b1"]
    gamma, beta = params["gamma"], params["beta"]
    mean, var = params["mean"], params["var"]
    wh, bh = params["wh"], params["bh"]
    ww, bw = params["ww"], params["bw"]
    mip = w1.shape[0]

    # Fold eval-mode BatchNorm + conv1 bias directly into the conv1 weight:
    #   bn(conv1(p)) = (w1 * s) @ p + ((b1 - mean) * s + beta)
    bn_scale = gamma / jnp.sqrt(var + eps)
    w1_eff = (w1 * bn_scale[:, None]).astype(jnp.float32)             # (mip, c)
    t1 = ((b1 - mean) * bn_scale + beta).astype(jnp.float32)          # (mip,)

    # Structural constants, stored in bf16 (0/1 selectors; 1/W, 1/H scales):
    #   Eh[j, r] = 1 iff r // W == j ;  Ew[j, r] = 1 iff r % W == j
    #   S = [Eh.T / W | Ew.T / H]  so that  x_flat @ S = [pool_h | pool_w]
    r = jnp.arange(hw)
    eh_f32 = (jnp.arange(h)[:, None] == (r // w)[None, :]).astype(jnp.float32)
    ew_f32 = (jnp.arange(w)[:, None] == (r % w)[None, :]).astype(jnp.float32)
    s_mat = jnp.concatenate([eh_f32.T / w, ew_f32.T / h], axis=1).astype(jnp.bfloat16)
    eh_mat = eh_f32.astype(jnp.bfloat16)
    ew_mat = ew_f32.astype(jnp.bfloat16)

    # Generation-aware VMEM budget and block sizing.
    vmem_cap = _tpu_vmem_capacity_bytes()
    vmem_budget = int(0.65 * vmem_cap)                      # ~0.65 of physical VMEM
    target_block_bytes = (12 << 20) if vmem_cap >= (96 << 20) else (6 << 20)
    x_itemsize = jnp.dtype(x.dtype).itemsize
    nb = _pick_batch_block(n, c, h, w, mip, x_itemsize,
                           target_block_bytes, vmem_budget)
    rows = nb * c
    grid = (n // nb,)

    # Apply the tiny 1x1-conv stage to all nb packed images at once via
    # block-diagonal weights, so every in-kernel op stays 2-D.
    eye = jnp.eye(nb, dtype=jnp.float32)
    w1_blk = jnp.kron(eye, w1_eff)                                     # (nb*mip, nb*c)
    wh_blk = jnp.kron(eye, wh.astype(jnp.float32))                     # (nb*c, nb*mip)
    ww_blk = jnp.kron(eye, ww.astype(jnp.float32))                     # (nb*c, nb*mip)
    t1_blk = jnp.tile(t1.reshape(mip, 1), (nb, 1))                     # (nb*mip, 1)
    bh_blk = jnp.tile(bh.reshape(c, 1).astype(jnp.float32), (nb, 1))   # (nb*c, 1)
    bw_blk = jnp.tile(bw.reshape(c, 1).astype(jnp.float32), (nb, 1))   # (nb*c, 1)

    x_flat = x.reshape(n * c, hw)      # free leading-dim merge; lane dim = H*W

    out_flat = pl.pallas_call(
        coord_att_kernel,
        out_shape=jax.ShapeDtypeStruct((n * c, hw), x.dtype),
        grid=grid,
        in_specs=[
            pl.BlockSpec((rows, hw), lambda i: (i, 0)),        # x block (nb images, lane-dense)
            pl.BlockSpec((hw, h + w), lambda i: (0, 0)),       # pooling selectors (bf16)
            pl.BlockSpec((h, hw), lambda i: (0, 0)),           # row-broadcast selectors (bf16)
            pl.BlockSpec((w, hw), lambda i: (0, 0)),           # col-broadcast selectors (bf16)
            pl.BlockSpec((nb * mip, rows), lambda i: (0, 0)),  # conv1 weight (BN-folded, blockdiag)
            pl.BlockSpec((nb * mip, 1), lambda i: (0, 0)),     # folded conv1-bias + BN shift
            pl.BlockSpec((rows, nb * mip), lambda i: (0, 0)),  # conv_h weight (blockdiag)
            pl.BlockSpec((rows, 1), lambda i: (0, 0)),         # conv_h bias
            pl.BlockSpec((rows, nb * mip), lambda i: (0, 0)),  # conv_w weight (blockdiag)
            pl.BlockSpec((rows, 1), lambda i: (0, 0)),         # conv_w bias
        ],
        out_specs=pl.BlockSpec((rows, hw), lambda i: (i, 0)),
        compiler_params=pltpu.CompilerParams(
            dimension_semantics=("parallel",),
            vmem_limit_bytes=vmem_budget),
    )(x_flat, s_mat, eh_mat, ew_mat, w1_blk, t1_blk,
      wh_blk, bh_blk, ww_blk, bw_blk)

    return out_flat.reshape(n, c, h, w)


def coord_att_ref(x, params, eps=1e-5):
    """Pure-JAX reference matching the PyTorch forward exactly (eval-mode BN)."""
    w1, b1 = params["w1"], params["b1"]
    gamma, beta = params["gamma"], params["beta"]
    mean, var = params["mean"], params["var"]
    wh, bh = params["wh"], params["bh"]
    ww, bw = params["ww"], params["bw"]
    n, c, h, w = x.shape
    x_h = x.mean(axis=3)                                    # (n, c, h)
    x_w = x.mean(axis=2)                                    # (n, c, w)
    y = jnp.concatenate([x_h, x_w], axis=2)                 # (n, c, h+w)
    y = jnp.einsum("mc,ncl->nml", w1, y) + b1[None, :, None]
    y = (y - mean[None, :, None]) / jnp.sqrt(var[None, :, None] + eps)
    y = y * gamma[None, :, None] + beta[None, :, None]
    y = y * jnp.clip(y + 3.0, 0.0, 6.0) / 6.0               # hardswish
    yh, yw = y[:, :, :h], y[:, :, h:]
    a_h = jax.nn.sigmoid(jnp.einsum("oc,ncl->nol", wh, yh) + bh[None, :, None])
    a_w = jax.nn.sigmoid(jnp.einsum("oc,ncl->nol", ww, yw) + bw[None, :, None])
    return x * a_w[:, :, None, :] * a_h[:, :, :, None]


def make_params(key, inp, oup, reduction=32):
    mip = max(8, inp // reduction)
    ks = jax.random.split(key, 10)
    return {
        "w1": 0.2 * jax.random.normal(ks[0], (mip, inp), jnp.float32),
        "b1": 0.1 * jax.random.normal(ks[1], (mip,), jnp.float32),
        "gamma": 0.5 + jax.random.uniform(ks[2], (mip,), jnp.float32),
        "beta": 0.1 * jax.random.normal(ks[3], (mip,), jnp.float32),
        "mean": 0.1 * jax.random.normal(ks[4], (mip,), jnp.float32),
        "var": 0.5 + jax.random.uniform(ks[5], (mip,), jnp.float32),
        "wh": 0.2 * jax.random.normal(ks[6], (oup, mip), jnp.float32),
        "bh": 0.1 * jax.random.normal(ks[7], (oup,), jnp.float32),
        "ww": 0.2 * jax.random.normal(ks[8], (oup, mip), jnp.float32),
        "bw": 0.1 * jax.random.normal(ks[9], (oup,), jnp.float32),
    }


if __name__ == "__main__":
    key = jax.random.PRNGKey(0)
    kx, kp = jax.random.split(key)

    N, C, H, W = 2, 4, 16, 16          # inp = oup = 4 -> mip = max(8, 4//32) = 8
    x = jax.random.normal(kx, (N, C, H, W), jnp.float32)
    params = make_params(kp, inp=C, oup=C, reduction=32)

    out = coord_att(x, params)
    out = jax.block_until_ready(out)

    ref = coord_att_ref(x, params)
    assert out.shape == (N, C, H, W)
    # Pooling/broadcast run as bf16-operand MXU matmuls (f32 accumulation) and
    # a_h/a_w pass through bf16; tolerance covers that quantization (observed
    # error is a few 1e-3).
    assert jnp.allclose(out, ref, atol=2e-2, rtol=2e-2), "mismatch vs reference"

    print("KERNEL_OK")
</pallas_src>

<mosaic_0001>
module attributes {stable_mosaic.version = 11 : i64} {
  func.func @coord_att_kernel(%arg0: i32, %arg1: memref<8x256xf32, #tpu.memory_space<vmem>>, %arg2: memref<256x32xbf16, #tpu.memory_space<vmem>>, %arg3: memref<16x256xbf16, #tpu.memory_space<vmem>>, %arg4: memref<16x256xbf16, #tpu.memory_space<vmem>>, %arg5: memref<16x8xf32, #tpu.memory_space<vmem>>, %arg6: memref<16x1xf32, #tpu.memory_space<vmem>>, %arg7: memref<8x16xf32, #tpu.memory_space<vmem>>, %arg8: memref<8x1xf32, #tpu.memory_space<vmem>>, %arg9: memref<8x16xf32, #tpu.memory_space<vmem>>, %arg10: memref<8x1xf32, #tpu.memory_space<vmem>>, %arg11: memref<8x256xf32, #tpu.memory_space<vmem>>) attributes {dimension_semantics = [#tpu.dimension_semantics<parallel>], iteration_bounds = array<i64: 1>, scalar_prefetch = 0 : i64, scratch_operands = 0 : i64, tpu.core_type = #tpu.core_type<tc>, window_params = [{transform_indices = @transform_0, window_bounds = array<i64: 8, 256>}, {pipeline_mode = #tpu.pipeline_mode<synchronous>, transform_indices = @transform_1, window_bounds = array<i64: 256, 32>}, {pipeline_mode = #tpu.pipeline_mode<synchronous>, transform_indices = @transform_2, window_bounds = array<i64: 16, 256>}, {pipeline_mode = #tpu.pipeline_mode<synchronous>, transform_indices = @transform_3, window_bounds = array<i64: 16, 256>}, {pipeline_mode = #tpu.pipeline_mode<synchronous>, transform_indices = @transform_4, window_bounds = array<i64: 16, 8>}, {pipeline_mode = #tpu.pipeline_mode<synchronous>, transform_indices = @transform_5, window_bounds = array<i64: 16, 1>}, {pipeline_mode = #tpu.pipeline_mode<synchronous>, transform_indices = @transform_6, window_bounds = array<i64: 8, 16>}, {pipeline_mode = #tpu.pipeline_mode<synchronous>, transform_indices = @transform_7, window_bounds = array<i64: 8, 1>}, {pipeline_mode = #tpu.pipeline_mode<synchronous>, transform_indices = @transform_8, window_bounds = array<i64: 8, 16>}, {pipeline_mode = #tpu.pipeline_mode<synchronous>, transform_indices = @transform_9, window_bounds = array<i64: 8, 1>}, {transform_indices = @transform_10, window_bounds = array<i64: 8, 256>}]} {
    %c0 = arith.constant 0 : index
    %c0_0 = arith.constant 0 : index
    %0 = vector.load %arg1[%c0, %c0_0] : memref<8x256xf32, #tpu.memory_space<vmem>>, vector<8x256xf32>
    %1 = arith.truncf %0 : vector<8x256xf32> to vector<8x256xbf16>
    %c0_1 = arith.constant 0 : index
    %c0_2 = arith.constant 0 : index
    %2 = vector.load %arg2[%c0_1, %c0_2] : memref<256x32xbf16, #tpu.memory_space<vmem>>, vector<256x32xbf16>
    %cst = arith.constant dense<0.000000e+00> : vector<8x32xf32>
    %3 = tpu.matmul %1, %2, %cst {dimension_numbers = #tpu.dot_dimension_numbers<[1], [0], [0], [1], [0, 0, 1, 1], [], []>} : vector<8x256xbf16>, vector<256x32xbf16>, vector<8x32xf32> -> vector<8x32xf32>
    %c0_3 = arith.constant 0 : index
    %c0_4 = arith.constant 0 : index
    %4 = vector.load %arg5[%c0_3, %c0_4] : memref<16x8xf32, #tpu.memory_space<vmem>>, vector<16x8xf32>
    %cst_5 = arith.constant dense<0.000000e+00> : vector<16x32xf32>
    %5 = tpu.matmul %4, %3, %cst_5 {dimension_numbers = #tpu.dot_dimension_numbers<[1], [0], [0], [1], [0, 0, 1, 1], [], []>} : vector<16x8xf32>, vector<8x32xf32>, vector<16x32xf32> -> vector<16x32xf32>
    %c0_6 = arith.constant 0 : index
    %c0_7 = arith.constant 0 : index
    %6 = vector.load %arg6[%c0_6, %c0_7] : memref<16x1xf32, #tpu.memory_space<vmem>>, vector<16x1xf32>
    %7 = vector.broadcast %6 : vector<16x1xf32> to vector<16x32xf32>
    %8 = arith.addf %5, %7 : vector<16x32xf32>
    %cst_8 = arith.constant 3.000000e+00 : f32
    %9 = vector.broadcast %cst_8 : f32 to vector<16x32xf32>
    %10 = arith.addf %8, %9 : vector<16x32xf32>
    %cst_9 = arith.constant 0.000000e+00 : f32
    %cst_10 = arith.constant 6.000000e+00 : f32
    %11 = vector.broadcast %cst_9 : f32 to vector<16x32xf32>
    %12 = arith.maximumf %11, %10 : vector<16x32xf32>
    %13 = vector.broadcast %cst_10 : f32 to vector<16x32xf32>
    %14 = arith.minimumf %13, %12 : vector<16x32xf32>
    %15 = arith.mulf %8, %14 : vector<16x32xf32>
    %cst_11 = arith.constant 0.166666672 : f32
    %16 = vector.broadcast %cst_11 : f32 to vector<16x32xf32>
    %17 = arith.mulf %15, %16 : vector<16x32xf32>
    %c0_12 = arith.constant 0 : index
    %c0_13 = arith.constant 0 : index
    %18 = vector.load %arg7[%c0_12, %c0_13] : memref<8x16xf32, #tpu.memory_space<vmem>>, vector<8x16xf32>
    %19 = vector.extract_strided_slice %17 {offsets = [0, 0], sizes = [16, 16], strides = [1, 1]} : vector<16x32xf32> to vector<16x16xf32>
    %cst_14 = arith.constant dense<0.000000e+00> : vector<8x16xf32>
    %20 = tpu.matmul %18, %19, %cst_14 {dimension_numbers = #tpu.dot_dimension_numbers<[1], [0], [0], [1], [0, 0, 1, 1], [], []>} : vector<8x16xf32>, vector<16x16xf32>, vector<8x16xf32> -> vector<8x16xf32>
    %c0_15 = arith.constant 0 : index
    %c0_16 = arith.constant 0 : index
    %21 = vector.load %arg8[%c0_15, %c0_16] : memref<8x1xf32, #tpu.memory_space<vmem>>, vector<8x1xf32>
    %22 = vector.broadcast %21 : vector<8x1xf32> to vector<8x16xf32>
    %23 = arith.addf %20, %22 : vector<8x16xf32>
    %24 = arith.negf %23 : vector<8x16xf32>
    %25 = math.exp %24 : vector<8x16xf32>
    %cst_17 = arith.constant 1.000000e+00 : f32
    %26 = vector.broadcast %cst_17 : f32 to vector<8x16xf32>
    %27 = arith.addf %26, %25 : vector<8x16xf32>
    %28 = arith.divf %26, %27 : vector<8x16xf32>
    %c0_18 = arith.constant 0 : index
    %c0_19 = arith.constant 0 : index
    %29 = vector.load %arg9[%c0_18, %c0_19] : memref<8x16xf32, #tpu.memory_space<vmem>>, vector<8x16xf32>
    %30 = vector.extract_strided_slice %17 {offsets = [0, 16], sizes = [16, 16], strides = [1, 1]} : vector<16x32xf32> to vector<16x16xf32>
    %cst_20 = arith.constant dense<0.000000e+00> : vector<8x16xf32>
    %31 = tpu.matmul %29, %30, %cst_20 {dimension_numbers = #tpu.dot_dimension_numbers<[1], [0], [0], [1], [0, 0, 1, 1], [], []>} : vector<8x16xf32>, vector<16x16xf32>, vector<8x16xf32> -> vector<8x16xf32>
    %c0_21 = arith.constant 0 : index
    %c0_22 = arith.constant 0 : index
    %32 = vector.load %arg10[%c0_21, %c0_22] : memref<8x1xf32, #tpu.memory_space<vmem>>, vector<8x1xf32>
    %33 = vector.broadcast %32 : vector<8x1xf32> to vector<8x16xf32>
    %34 = arith.addf %31, %33 : vector<8x16xf32>
    %35 = arith.negf %34 : vector<8x16xf32>
    %36 = math.exp %35 : vector<8x16xf32>
    %cst_23 = arith.constant 1.000000e+00 : f32
    %37 = vector.broadcast %cst_23 : f32 to vector<8x16xf32>
    %38 = arith.addf %37, %36 : vector<8x16xf32>
    %39 = arith.divf %37, %38 : vector<8x16xf32>
    %40 = arith.truncf %28 : vector<8x16xf32> to vector<8x16xbf16>
    %c0_24 = arith.constant 0 : index
    %c0_25 = arith.constant 0 : index
    %41 = vector.load %arg3[%c0_24, %c0_25] : memref<16x256xbf16, #tpu.memory_space<vmem>>, vector<16x256xbf16>
    %cst_26 = arith.constant dense<0.000000e+00> : vector<8x256xf32>
    %42 = tpu.matmul %40, %41, %cst_26 {dimension_numbers = #tpu.dot_dimension_numbers<[1], [0], [0], [1], [0, 0, 1, 1], [], []>} : vector<8x16xbf16>, vector<16x256xbf16>, vector<8x256xf32> -> vector<8x256xf32>
    %43 = arith.truncf %39 : vector<8x16xf32> to vector<8x16xbf16>
    %c0_27 = arith.constant 0 : index
    %c0_28 = arith.constant 0 : index
    %44 = vector.load %arg4[%c0_27, %c0_28] : memref<16x256xbf16, #tpu.memory_space<vmem>>, vector<16x256xbf16>
    %cst_29 = arith.constant dense<0.000000e+00> : vector<8x256xf32>
    %45 = tpu.matmul %43, %44, %cst_29 {dimension_numbers = #tpu.dot_dimension_numbers<[1], [0], [0], [1], [0, 0, 1, 1], [], []>} : vector<8x16xbf16>, vector<16x256xbf16>, vector<8x256xf32> -> vector<8x256xf32>
    %46 = arith.mulf %42, %45 : vector<8x256xf32>
    %47 = arith.mulf %0, %46 : vector<8x256xf32>
    %c0_30 = arith.constant 0 : index
    %c0_31 = arith.constant 0 : index
    %48 = vector.load %arg11[%c0_30, %c0_31] : memref<8x256xf32, #tpu.memory_space<vmem>>, vector<8x256xf32>
    tpu.vector_store %arg11[%c0_30, %c0_31], %47 {strides = array<i32>} : memref<8x256xf32, #tpu.memory_space<vmem>>, vector<8x256xf32>,
    return
  }
  func.func @transform_0(%arg0: i32) -> (i32, i32) {
    %c0_i32 = arith.constant 0 : i32
    %c0_i32_0 = arith.constant 0 : i32
    return %arg0, %c0_i32 : i32, i32
  }
  func.func @transform_1(%arg0: i32) -> (i32, i32) {
    %c0_i32 = arith.constant 0 : i32
    %c0_i32_0 = arith.constant 0 : i32
    %c0_i32_1 = arith.constant 0 : i32
    return %c0_i32, %c0_i32_0 : i32, i32
  }
  func.func @transform_2(%arg0: i32) -> (i32, i32) {
    %c0_i32 = arith.constant 0 : i32
    %c0_i32_0 = arith.constant 0 : i32
    %c0_i32_1 = arith.constant 0 : i32
    return %c0_i32, %c0_i32_0 : i32, i32
  }
  func.func @transform_3(%arg0: i32) -> (i32, i32) {
    %c0_i32 = arith.constant 0 : i32
    %c0_i32_0 = arith.constant 0 : i32
    %c0_i32_1 = arith.constant 0 : i32
    return %c0_i32, %c0_i32_0 : i32, i32
  }
  func.func @transform_4(%arg0: i32) -> (i32, i32) {
    %c0_i32 = arith.constant 0 : i32
    %c0_i32_0 = arith.constant 0 : i32
    %c0_i32_1 = arith.constant 0 : i32
    return %c0_i32, %c0_i32_0 : i32, i32
  }
  func.func @transform_5(%arg0: i32) -> (i32, i32) {
    %c0_i32 = arith.constant 0 : i32
    %c0_i32_0 = arith.constant 0 : i32
    %c0_i32_1 = arith.constant 0 : i32
    return %c0_i32, %c0_i32_0 : i32, i32
  }
  func.func @transform_6(%arg0: i32) -> (i32, i32) {
    %c0_i32 = arith.constant 0 : i32
    %c0_i32_0 = arith.constant 0 : i32
    %c0_i32_1 = arith.constant 0 : i32
    return %c0_i32, %c0_i32_0 : i32, i32
  }
  func.func @transform_7(%arg0: i32) -> (i32, i32) {
    %c0_i32 = arith.constant 0 : i32
    %c0_i32_0 = arith.constant 0 : i32
    %c0_i32_1 = arith.constant 0 : i32
    return %c0_i32, %c0_i32_0 : i32, i32
  }
  func.func @transform_8(%arg0: i32) -> (i32, i32) {
    %c0_i32 = arith.constant 0 : i32
    %c0_i32_0 = arith.constant 0 : i32
    %c0_i32_1 = arith.constant 0 : i32
    return %c0_i32, %c0_i32_0 : i32, i32
  }
  func.func @transform_9(%arg0: i32) -> (i32, i32) {
    %c0_i32 = arith.constant 0 : i32
    %c0_i32_0 = arith.constant 0 : i32
    %c0_i32_1 = arith.constant 0 : i32
    return %c0_i32, %c0_i32_0 : i32, i32
  }
  func.func @transform_10(%arg0: i32) -> (i32, i32) {
    %c0_i32 = arith.constant 0 : i32
    %c0_i32_0 = arith.constant 0 : i32
    return %arg0, %c0_i32 : i32, i32
  }
}

</mosaic_0001>

<bundles_post_ra>
// kernel: tpu_custom_call.1
= control target key start
LH: loop header
LB: loop body
LE: loop exit
PB: predicated region body
PF: predicated region fallthrough
CT: control target
= control target key end

     0   :  { %s966_s0 = inlined_call_operand.vmem [shape: f32[8,256], index: 0, kind: input, shape index: {}]   ;;  %s967_s1 = inlined_call_operand.vmem [shape: bf16[256,32], index: 1, kind: input, shape index: {}]   ;;  %s968_s2 = inlined_call_operand.vmem [shape: bf16[16,256], index: 2, kind: input, shape index: {}]   ;;  %s969_s3 = inlined_call_operand.vmem [shape: bf16[16,256], index: 3, kind: input, shape index: {}]   ;;  %s970_s4 = inlined_call_operand.vmem [shape: f32[16,8], index: 4, kind: input, shape index: {}]   ;;  %s971_s5 = inlined_call_operand.vmem [shape: f32[16,1], index: 5, kind: input, shape index: {}]   ;;  %s972_s6 = inlined_call_operand.vmem [shape: f32[8,16], index: 6, kind: input, shape index: {}]   ;;  %s973_s7 = inlined_call_operand.vmem [shape: f32[8,1], index: 7, kind: input, shape index: {}]   ;;  %s974_s8 = inlined_call_operand.vmem [shape: f32[8,16], index: 8, kind: input, shape index: {}]   ;;  %s975_s9 = inlined_call_operand.vmem [shape: f32[8,1], index: 9, kind: input, shape index: {}]   ;;  %s976_s10 = inlined_call_operand.hbm [shape: f32[8,256], index: 10, kind: output, shape index: {}]  }
   0x1   :  { %v727_v0 = vld [vmem:[%s967_s1 + $0x40] sm:$0xff]   ;;  %v729_v2 = vld [vmem:[%s967_s1 + $0x48] sm:$0xff]   ;;  %v731_v4 = vld [vmem:[%s967_s1 + $0x50] sm:$0xff]  }
   0x2   :  { %v728_v1 = vld [vmem:[%s967_s1] sm:$0xff]   ;;  %658 = vmatprep.subr.bf16.mxu0 %v727_v0  ;;  %v730_v3 = vld [vmem:[%s967_s1 + $0x8] sm:$0xff]   ;;  %v732_v5 = vld [vmem:[%s967_s1 + $0x10] sm:$0xff]  }
   0x3   :  { %659 = vmatpush3.bf16.msra.mxu0 %v728_v1  ;;  %v733_v6 = vld [vmem:[%s967_s1 + $0x58] sm:$0xff]   ;;  %v735_v8 = vld [vmem:[%s967_s1 + $0x60] sm:$0xff]   ;;  %v737_v10 = vld [vmem:[%s967_s1 + $0x68] sm:$0xff]  }
   0x4   :  { %660 = vmatprep.subr.bf16.mxu0 %v729_v2  ;;  %v734_v7 = vld [vmem:[%s967_s1 + $0x18] sm:$0xff]   ;;  %v736_v9 = vld [vmem:[%s967_s1 + $0x20] sm:$0xff]   ;;  %v878_v11 = vld [vmem:[%s966_s0 + $0x8] sm:$0xff] }
   0x5   :  { %v40_v12 = vpack.c.bf16 %v878_v11, %v878_v11 }
   0x7   :  { %661 = vmatpush3.bf16.msra.mxu0 %v730_v3 }
   0x8   :  { %662 = vmatprep.subr.bf16.mxu0 %v731_v4 }
   0xb   :  { %663 = vmatpush3.bf16.msra.mxu0 %v732_v5 }
   0xc   :  { %664 = vmatprep.subr.bf16.mxu0 %v733_v6 }
   0xf   :  { %665 = vmatpush3.bf16.msra.mxu0 %v734_v7 }
  0x10   :  { %666 = vmatprep.subr.bf16.mxu0 %v735_v8 }
  0x11   :  { %15 = vsyncpa [#allocation3], 0  ;;  %v738_v13 = vld [vmem:[%s967_s1 + $0x28] sm:$0xff]   ;;  %201 = vmatprep.mubr.bf16.mxu0 %v40_v12  ;;  %v739_v14 = vld [vmem:[%s967_s1 + $0x70] sm:$0xff]   ;;  %vm223_vm0 = vcmask 64512   ;;  %v781_v22 = vmov 0  }
  0x12   :  { %v740_v15 = vld [vmem:[%s967_s1 + $0x30] sm:$0xff]   ;;  %v741_v16 = vld [vmem:[%s967_s1 + $0x78] sm:$0xff]   ;;  %v900_v18 = vld [vmem:[%s966_s0] sm:$0xff]  ;;  %720 = vset.pattern.permute.xlu0 %v781_v22  ;;  %726 = vset.pattern.permute.xlu1 %v781_v22  ;;  %v782_v31 = vmov 0.0|0.0   ;;  %vm783_vm1 = vmmov 0   ;;  %v784_v32 = vmov 0.0  }
  0x13   :  { %667 = vmatpush3.bf16.msra.mxu0 %v736_v9  ;;  %v742_v17 = vld [vmem:[%s967_s1 + $0x38] sm:$0xff]   ;;  %v39_v19 = vpack.c.bf16 %v900_v18, %v900_v18  ;;  %v209_v20 = vld [vmem:[%s970_s4] sm:$0xff]  ;;  %v212_v23 = vld [vmem:[%s971_s5 + $0x8] sm:$0xff]  ;;  %vm322_vm2 = vcmask 130048  }
  0x14   :  { %668 = vmatprep.subr.bf16.mxu0 %v737_v10  ;;  %691 = vmatprep.mubr.msk.f32.mxu1 %vm223_vm0, %v209_v20  ;;  %v211_v21 = vld [vmem:[%s971_s5] sm:$0xff]  ;;  %v210_v30 = vld [vmem:[%s970_s4 + $0x8] sm:$0xff]  ;;  %s785_s4 = smov 112  }
  0x15   :  { %215 = vperm.xlu0 %720, %v211_v21   ;;  %v403_v24 = vld [vmem:[%s975_s9] sm:$0xff] }
  0x16   :  { %v315_v51 = vld [vmem:[%s972_s6] sm:$0xff] }
  0x17   :  { %669 = vmatpush3.bf16.msra.mxu0 %v738_v13  ;;  %v316_v52 = vld [vmem:[%s973_s7] sm:$0xff] }
  0x18   :  { %670 = vmatprep.subr.bf16.mxu0 %v739_v14  ;;  %v402_v57 = vld [vmem:[%s974_s8] sm:$0xff] }
  0x19   :  { %220 = vperm.xlu0 %720, %v212_v23   ;;  %v745_v63 = vld [vmem:[%s968_s2 + $0x4] ss:$8 sps:$4 sm:$0xff]   ;;  %v743_v0 = vld [vmem:[%s968_s2] ss:$8 sps:$4 sm:$0xff]   ;;  %s786_s2 = smov [#allocation2]  }
  0x1a   :  { %v748_v3 = vld [vmem:[%s969_s3 + $0x4] ss:$8 sps:$4 sm:$0xff]   ;;  %v746_v5 = vld [vmem:[%s969_s3] ss:$8 sps:$4 sm:$0xff]   ;;  %s622_s3 = sshll.u32 %s786_s2, 4  ;;  %s623_s3 = int_to_ptr.vmem [resolvable:$true] %s622_s3 }
  0x1b   :  { %671 = vmatpush3.bf16.msra.mxu0 %v740_v15  ;;  %s757_s26 = scalar_lea.vmem %s623_s3, 256  ;;  %p762_p1 = scmp.lt.s32.totalorder %s623_s3, %s623_s3 }
  0x1c   :  { %672 = vmatprep.subr.bf16.mxu0 %v741_v16  ;;  %p758_p0 = scmp.ne.s32.totalorder %s623_s3, %s757_s26  ;;  %p763_p2 = scmp.lt.s32.totalorder %s757_s26, %s757_s26 }
  0x1d   :  { %406 = vperm.xlu0 %720, %v403_v24  }
  0x1e   :  { %p764_p3 = por %p763_p2, %p762_p1 }
  0x1f   :  { %673 = vmatpush3.bf16.msra.mxu0 %v742_v17 }
  0x20   :  { %p765_p4 = pnand %p764_p3, %p758_p0 }
  0x22   :  { %202 = vmatmul.mubr.bf16.vlgmr.msra.gmra.mrb[0].mxu0 %v39_v19 }
  0x94   :  { %v216_v33 = vpop.permute.xlu0 %215 }
  0x98   :  { %v221_v34 = vpop.permute.xlu0 %220 }
  0x9c   :  { %v407_v7 = vpop.permute.xlu0 %406 }
  0xf5   :  { %v674_v25 = vpop.f32.mrb[0].mxu0 }
  0xf6   :  { %v675_v26 = vpop.f32.mrb[1].mxu0 }
  0xf7   :  { %v676_v27 = vadd.f32 %v675_v26, %v674_v25  ;;  %v677_v28 = vpop.f32.mrb[2].mxu0 }
  0xf8   :  { %v678_v29 = vpop.f32.mrb[3].mxu0 }
  0xf9   :  { %689 = vmatprep.subr.mxu1 %v676_v27 }
  0xfa   :  { %690 = vmatpush3.msra.mxu1 %v676_v27 }
  0xfb   :  { %692 = vmatmul.mubr.msk.f32.vlgmr.msra.gmra.mrb[0].mxu1 %vm223_vm0, %v210_v30  ;;  %708 = vmatprep.subr.bf16.mxu1 %v782_v31 }
  0xfc   :  { %698 = vmatprep.mubr.msk.f32.mxu1 %vm783_vm1, %v784_v32 }
 0x1ce   :  { %v693_v35 = vpop.f32.mrb[0].mxu1 }
 0x1cf   :  { %v302_v36 = vadd.f32 %v693_v35, %v221_v34  ;;  %v296_v37 = vpop.f32.mrb[1].mxu1 }
 0x1d0   :  { %v297_v38 = vadd.f32 %v296_v37, %v216_v33 }
 0x1d1   :  { %v306_v39 = vadd.f32 3.0, %v302_v36 }
 0x1d2   :  { %v305_v40 = vadd.f32 3.0, %v297_v38 }
 0x1d3   :  { %v308_v41 = vmax.f32 %v306_v39, 0.0 }
 0x1d4   :  { %v307_v42 = vmax.f32 %v305_v40, 0.0 }
 0x1d5   :  { %v310_v43 = vmin.f32 %v308_v41, 6.0 }
 0x1d6   :  { %v309_v44 = vmin.f32 %v307_v42, 6.0 }
 0x1d7   :  { %v312_v45 = vmul.f32 %v310_v43, %v302_v36 }
 0x1d8   :  { %v311_v46 = vmul.f32 %v309_v44, %v297_v38 }
 0x1d9   :  { %v314_v47 = vmul.f32 0.16666667, %v312_v45 }
 0x1da   :  { %v313_v48 = vmul.f32 0.16666667, %v311_v46 }
 0x1dc   :  { %v709_v49 = vpack.c.bf16 %v314_v47, %v313_v48  ;;  %v721_v50 = vpack.i.bf16 %v314_v47, %v313_v48 }
 0x1de   :  { %722 = vrot.lane.b32.xlu1 %v721_v50, %s785_s4  ;;  %710 = vmatpush3.bf16.msra.mxu1 %v709_v49 }
 0x1df   :  { %711 = vmatprep.subr.bf16.mxu1 %v782_v31 }
 0x1e1   :  { %699 = vmatmul.mubr.msk.f32.vlgmr.msra.gmra.mrb[2].mxu1 %vm322_vm2, %v315_v51 }
 0x1e2   :  { %705 = vmatprep.mubr.msk.f32.mxu1 %vm783_vm1, %v784_v32  ;;  %319 = vperm.xlu1 %726, %v316_v52  }
 0x250   :  { %v723_v53 = vpop.permute.xlu1 %722 }
 0x251   :  { %v725_v54 = vunpack.i.h.bf16 %v723_v53  ;;  %v724_v55 = vunpack.i.l.bf16 %v723_v53 }
 0x253   :  { %v712_v56 = vpack.c.bf16 %v725_v54, %v724_v55 }
 0x255   :  { %713 = vmatpush3.bf16.msra.mxu1 %v712_v56 }
 0x256   :  { %512 = vmatprep.subr.bf16.mxu1 %v745_v63 }
 0x258   :  { %706 = vmatmul.mubr.msk.f32.vlgmr.msra.gmra.mrb[4].mxu1 %vm322_vm2, %v402_v57 }
 0x259   :  { %544 = vmatprep.mubr.bf16.mxu1 %v781_v22  ;;  %513 = vmatpush1.bf16.msra.mxu1 %v743_v0 }
 0x25a   :  { %569 = vmatprep.subr.bf16.mxu1 %v748_v3 }
 0x261   :  { %v320_v58 = vpop.permute.xlu1 %319 }
 0x2b4   :  { %v392_v59 = vpop.f32.mrb[2].mxu1 }
 0x2b5   :  { %v393_v60 = vadd.f32 %v392_v59, %v320_v58  ;;  %v700_v61 = vpop.f32.mrb[3].mxu1 }
 0x2b7   :  { %v649_v62 = vmul.f32 -1.442695, %v393_v60 }
 0x2b9   :  { %749 = vpow2.f32 %v649_v62 }
 0x2c3   :  { %v750_v1 = vpop.eup %749 }
 0x2c4   :  { %v399_v2 = vadd.f32 1.0, %v750_v1 }
 0x2c6   :  { %751 = vrcp.f32 %v399_v2 }
 0x2d0   :  { %v752_v4 = vpop.eup %751 }
 0x2d1   :  { %v496_v6 = vpack.c.bf16 %v752_v4, %v752_v4 }
 0x2d3   :  { %654 = vmatmul.mubr.msk.bf16.vlgmr.msra.gmra.mrb[8].mxu1 %vm322_vm2, %v496_v6 }
 0x2d4   :  { %570 = vmatpush1.bf16.msra.mxu1 %v746_v5  ;;  %601 = vmatprep.mubr.bf16.mxu1 %v781_v22 }
 0x32b   :  { %v486_v8 = vpop.f32.mrb[4].mxu1 }
 0x32c   :  { %v487_v9 = vadd.f32 %v486_v8, %v407_v7  ;;  %v707_v10 = vpop.f32.mrb[5].mxu1 }
 0x32e   :  { %v651_v12 = vmul.f32 -1.442695, %v487_v9 }
 0x330   :  { %753 = vpow2.f32 %v651_v12 }
 0x33a   :  { %v754_v13 = vpop.eup %753 }
 0x33b   :  { %v493_v14 = vadd.f32 1.0, %v754_v13 }
 0x33d   :  { %755 = vrcp.f32 %v493_v14 }
 0x347   :  { %v756_v15 = vpop.eup %755 }
 0x348   :  { %v553_v16 = vpack.c.bf16 %v756_v15, %v756_v15 }
 0x34a   :  { %657 = vmatmul.mubr.msk.bf16.vlgmr.msra.gmra.mrb[12].mxu1 %vm322_vm2, %v553_v16 }
 0x3a6   :  { %v546_v17 = vpop.f32.mrb[8].mxu1 }
 0x3a7   :  { %v548_v19 = vpop.f32.mrb[9].mxu1 }
 0x3a8   :  { %v550_v20 = vpop.f32.mrb[10].mxu1 }
 0x3a9   :  { %v551_v21 = vpop.f32.mrb[11].mxu1 }
 0x41d   :  { %v603_v23 = vpop.f32.mrb[12].mxu1 }
 0x41e   :  { %v610_v24 = vmul.f32 %v603_v23, %v546_v17  ;;  %v605_v22 = vpop.f32.mrb[13].mxu1 }
 0x41f   :  { %v611_v25 = vmul.f32 %v605_v22, %v548_v19  ;;  %v607_v26 = vpop.f32.mrb[14].mxu1 }
 0x420   :  { %v612_v27 = vmul.f32 %v610_v24, %v900_v18  ;;  %v608_v28 = vpop.f32.mrb[15].mxu1 }
 0x421   :  { %v613_v29 = vmul.f32 %v611_v25, %v878_v11 }
 0x422   :  { %614 = vst [vmem:[#allocation2] sm:$0xff] %v612_v27 }
 0x423   :  { %615 = vst [vmem:[#allocation2 + $0x8] sm:$0xff] %v613_v29 }
 0x424   :  { %768 = shalt.err (!%p765_p4)
}
 0x425   :  { %s769_s29 = scalar_lea.hbm %s976_s10, 256 }
 0x426   :  { %p770_p5 = scmp.ne.s32.totalorder %s976_s10, %s769_s29  ;;  %p773_p6 = scmp.lt.u32.totalorder %s769_s29, %s976_s10 }
 0x428   :  { %p775_p7 = pnand %p773_p6, %p770_p5 }
 0x42a   :  { %778 = shalt.err (!%p775_p7)
}
 0x42b   :  { %625 = dma.vmem_to_hbm [thread:$0]  %s623_s3, 256, %s976_s10, [#allocation3]  }
 0x42c   :  { %779 = dma.done.wait [#allocation3], 256  }
 0x42d   :  { %780 = vsyncadd [#allocation3], 4294967040 }
 0x42e   :  { %629 = vsyncpa [#allocation3], 1 }

</bundles_post_ra>
